<compile_context>
chip_gen: v5e
topology: v5e:2x2
jax: 0.10.0
libtpu: 0.0.40
codegen_flags: <defaults>
</compile_context>

<pallas_src>
import functools

import jax
import jax.numpy as jnp
from jax.experimental import pallas as pl
from jax.experimental.pallas import tpu as pltpu


def _log_softmax_lastdim(x):
    m = jnp.max(x, axis=-1, keepdims=True)
    s = x - m
    return s - jnp.log(jnp.sum(jnp.exp(s), axis=-1, keepdims=True))


def _round_up(x, m):
    return ((x + m - 1) // m) * m


# --------------------------------------------------------------------------- #
# Fused kernel: tiled global-average-pool over H*W for both branches, with the
# stem 1x1-conv + roll/pitch FC heads + log_softmax as a last-tile epilogue.
# grid = (batch ["parallel" -> v7x megacore], hw_tile ["arbitrary" reduction]).
# --------------------------------------------------------------------------- #
def fused_kernel(mono_ref, depth_ref,
                 wm_ref, bm_ref, wd_ref, bd_ref,
                 wr1_ref, wr2_ref, br_ref, wp1_ref, wp2_ref, bp_ref,
                 out_ref, accm_ref, accd_ref,
                 *, hw, tile_hw, c, d, out_pad, inv_hw):
    t = pl.program_id(1)

    @pl.when(t == 0)
    def _():
        accm_ref[...] = jnp.zeros_like(accm_ref)   # (1, c_pad): pad lanes stay 0
        accd_ref[...] = jnp.zeros_like(accd_ref)

    xm = mono_ref[...]                             # (1, C, tile_hw)
    xd = depth_ref[...]
    if hw % tile_hw != 0:
        # Last tile hangs over the edge of H*W: zero the out-of-bounds lanes so
        # the running sum stays exact (no host-side padding copy needed).
        limit = hw - t * tile_hw
        lane = jax.lax.broadcasted_iota(jnp.int32, (1, c, tile_hw), 2)
        keep = lane < limit
        xm = jnp.where(keep, xm, 0.0)
        xd = jnp.where(keep, xd, 0.0)

    # Accumulate raw per-(channel) sums; the 1/HW scale is applied once at the end.
    accm_ref[:, :c] += jnp.sum(xm, axis=-1)        # (1, C)
    accd_ref[:, :c] += jnp.sum(xd, axis=-1)

    @pl.when(t == pl.num_programs(1) - 1)
    def _():
        pm = accm_ref[...] * inv_hw                # (1, c_pad), zero-padded channels
        pd = accd_ref[...] * inv_hw

        x1 = jnp.dot(pm, wm_ref[...], preferred_element_type=jnp.float32) + bm_ref[...]
        x2 = jnp.dot(pd, wd_ref[...], preferred_element_type=jnp.float32) + bd_ref[...]

        # torch.cat((x1, x2), 1) @ W == x1 @ W[:F] + x2 @ W[F:]  (no in-kernel concat)
        roll = (jnp.dot(x1, wr1_ref[...], preferred_element_type=jnp.float32)
                + jnp.dot(x2, wr2_ref[...], preferred_element_type=jnp.float32)
                + br_ref[...])                     # (1, D)
        pitch = (jnp.dot(x1, wp1_ref[...], preferred_element_type=jnp.float32)
                 + jnp.dot(x2, wp2_ref[...], preferred_element_type=jnp.float32)
                 + bp_ref[...])                    # (1, D)

        lroll = _log_softmax_lastdim(roll)
        lpitch = _log_softmax_lastdim(pitch)

        pieces = [lroll, lpitch, roll, pitch]
        pad_cols = out_pad - 4 * d
        if pad_cols > 0:                           # lane-dense 128-wide unmasked store
            pieces.append(jnp.zeros((1, pad_cols), jnp.float32))
        out_ref[0] = jnp.concatenate(pieces, axis=-1)


def _pick_hw_tile(hw, c, vmem_budget_bytes=16 << 20, max_tile=128 * 1024):
    """Largest spatial tile (multiple of 128, or all of H*W if it fits) whose
    double-buffered DMA windows for BOTH image streams fit the VMEM budget."""
    cap = vmem_budget_bytes // (2 * 2 * c * 4)     # 2 streams x 2 buffers x C rows x f32
    cap = min(cap, max_tile)
    if hw <= cap:
        return hw                                  # single tile (any size allowed)
    return max(128, (cap // 128) * 128)


def prepare_params(params):
    """One-time parameter prep: pad the stem contraction to a full sublane tile and
    pre-split the head weights so the kernel never concatenates features."""
    wm, bm, wd, bd, wr, br, wp, bp = params
    c, feat = wm.shape
    c_pad = _round_up(max(c, 1), 8)
    if c_pad != c:
        wm = jnp.pad(wm, ((0, c_pad - c), (0, 0)))
        wd = jnp.pad(wd, ((0, c_pad - c), (0, 0)))
    wr1, wr2 = wr[:feat], wr[feat:]
    wp1, wp2 = wp[:feat], wp[feat:]
    return (wm, bm, wd, bd, wr1, wr2, br, wp1, wp2, bp)


def network_forward(mono, depth, prepared, tile_hw=None):
    """mono, depth: NCHW float32.  Returns (logged_roll, logged_pitch, roll, pitch)."""
    wm, bm, wd, bd, wr1, wr2, br, wp1, wp2, bp = prepared
    B, C, H, W = mono.shape
    HW = H * W
    c_pad, F = wm.shape
    D = wr1.shape[1]
    OUT_PAD = max(128, _round_up(4 * D, 128))

    if tile_hw is None:
        tile_hw = _pick_hw_tile(HW, C)
    n_t = pl.cdiv(HW, tile_hw)

    mono_r = mono.reshape(B, C, HW)                # metadata-only reshapes (no copy)
    depth_r = depth.reshape(B, C, HW)

    kern = functools.partial(fused_kernel, hw=HW, tile_hw=tile_hw, c=C, d=D,
                             out_pad=OUT_PAD, inv_hw=1.0 / float(HW))

    img_spec = pl.BlockSpec((1, C, tile_hw), lambda b, t: (b, 0, t))
    const2 = lambda b, t: (0, 0)                   # small resident weight blocks

    packed = pl.pallas_call(
        kern,
        grid=(B, n_t),
        in_specs=[
            img_spec,                              # mono
            pl.BlockSpec((1, C, tile_hw), lambda b, t: (b, 0, t)),  # depth
            pl.BlockSpec((c_pad, F), const2),      # wm (padded)
            pl.BlockSpec((1, F), const2),          # bm
            pl.BlockSpec((c_pad, F), const2),      # wd (padded)
            pl.BlockSpec((1, F), const2),          # bd
            pl.BlockSpec((F, D), const2),          # wr1
            pl.BlockSpec((F, D), const2),          # wr2
            pl.BlockSpec((1, D), const2),          # br
            pl.BlockSpec((F, D), const2),          # wp1
            pl.BlockSpec((F, D), const2),          # wp2
            pl.BlockSpec((1, D), const2),          # bp
        ],
        out_specs=pl.BlockSpec((1, 1, OUT_PAD), lambda b, t: (b, 0, 0)),
        out_shape=jax.ShapeDtypeStruct((B, 1, OUT_PAD), jnp.float32),
        scratch_shapes=[pltpu.VMEM((1, c_pad), jnp.float32),
                        pltpu.VMEM((1, c_pad), jnp.float32)],
        compiler_params=pltpu.CompilerParams(
            dimension_semantics=("parallel", "arbitrary"),
            vmem_limit_bytes=32 * 1024 * 1024),
    )(mono_r, depth_r, wm, bm, wd, bd, wr1, wr2, br, wp1, wp2, bp)

    packed = packed.reshape(B, OUT_PAD)
    logged_roll = packed[:, 0 * D:1 * D]
    logged_pitch = packed[:, 1 * D:2 * D]
    roll = packed[:, 2 * D:3 * D]
    pitch = packed[:, 3 * D:4 * D]
    return logged_roll, logged_pitch, roll, pitch


def init_params(key, c_in, feat, dim_out):
    """Deterministic synthetic parameters (PyTorch-Linear-style uniform init)."""
    ks = jax.random.split(key, 4)

    def lin(k, fan_in, fan_out):
        kw, kb = jax.random.split(k)
        scale = 1.0 / jnp.sqrt(jnp.float32(fan_in))
        w = jax.random.uniform(kw, (fan_in, fan_out), jnp.float32, -scale, scale)
        b = jax.random.uniform(kb, (1, fan_out), jnp.float32, -scale, scale)
        return w, b

    wm, bm = lin(ks[0], c_in, feat)          # mono backbone stem (1x1 conv)
    wd, bd = lin(ks[1], c_in, feat)          # depth backbone stem (1x1 conv)
    wr, br = lin(ks[2], 2 * feat, dim_out)   # roll_fc
    wp, bp = lin(ks[3], 2 * feat, dim_out)   # pitch_fc
    return (wm, bm, wd, bd, wr, br, wp, bp)


def reference_forward(mono, depth, params):
    """Pure-JAX reference with identical semantics (for correctness check)."""
    wm, bm, wd, bd, wr, br, wp, bp = params

    def branch(x, w, b):
        pooled = jnp.mean(x, axis=(2, 3))    # global average pool -> (B, C)
        return pooled @ w + b                # 1x1-conv stem (pool-first form)

    x1 = branch(mono, wm, bm)
    x2 = branch(depth, wd, bd)
    feat = jnp.concatenate([x1, x2], axis=1)
    roll = feat @ wr + br
    pitch = feat @ wp + bp
    return (jax.nn.log_softmax(roll, axis=1),
            jax.nn.log_softmax(pitch, axis=1), roll, pitch)


if __name__ == "__main__":
    key = jax.random.PRNGKey(0)
    B, C, H, W = 2, 3, 16, 16          # small NCHW inputs (mono + depth, 3 ch each)
    FEAT, DIM_FC_OUT = 32, 16          # per-branch feature width, classification bins

    k_mono, k_depth, k_param = jax.random.split(key, 3)
    mono = jax.random.normal(k_mono, (B, C, H, W), jnp.float32)
    depth = jax.random.normal(k_depth, (B, C, H, W), jnp.float32)
    params = init_params(k_param, C, FEAT, DIM_FC_OUT)
    prepared = prepare_params(params)

    # tile_hw=128 -> two reduction steps per image at toy size, exercising the
    # resident-accumulator + last-tile head-epilogue path.
    outs = network_forward(mono, depth, prepared, tile_hw=128)
    for o in outs:
        jax.block_until_ready(o)

    refs = reference_forward(mono, depth, params)
    for o, r in zip(outs, refs):
        assert o.shape == (B, DIM_FC_OUT) and o.dtype == jnp.float32
        assert jnp.max(jnp.abs(o - r)) < 1e-3, "kernel/reference mismatch"

    print("KERNEL_OK")
</pallas_src>

<mosaic_0001>
module attributes {stable_mosaic.version = 11 : i64} {
  func.func @fused_kernel(%arg0: i32, %arg1: i32, %arg2: memref<1x3x128xf32, #tpu.memory_space<vmem>>, %arg3: memref<1x3x128xf32, #tpu.memory_space<vmem>>, %arg4: memref<8x32xf32, #tpu.memory_space<vmem>>, %arg5: memref<1x32xf32, #tpu.memory_space<vmem>>, %arg6: memref<8x32xf32, #tpu.memory_space<vmem>>, %arg7: memref<1x32xf32, #tpu.memory_space<vmem>>, %arg8: memref<32x16xf32, #tpu.memory_space<vmem>>, %arg9: memref<32x16xf32, #tpu.memory_space<vmem>>, %arg10: memref<1x16xf32, #tpu.memory_space<vmem>>, %arg11: memref<32x16xf32, #tpu.memory_space<vmem>>, %arg12: memref<32x16xf32, #tpu.memory_space<vmem>>, %arg13: memref<1x16xf32, #tpu.memory_space<vmem>>, %arg14: memref<1x1x128xf32, #tpu.memory_space<vmem>>, %arg15: memref<1x8xf32, #tpu.memory_space<vmem>>, %arg16: memref<1x8xf32, #tpu.memory_space<vmem>>) attributes {dimension_semantics = [#tpu.dimension_semantics<parallel>, #tpu.dimension_semantics<arbitrary>], iteration_bounds = array<i64: 2, 2>, scalar_prefetch = 0 : i64, scratch_operands = 2 : i64, tpu.core_type = #tpu.core_type<tc>, window_params = [{transform_indices = @transform_0, window_bounds = array<i64: 1, 3, 128>}, {transform_indices = @transform_1, window_bounds = array<i64: 1, 3, 128>}, {pipeline_mode = #tpu.pipeline_mode<synchronous>, transform_indices = @transform_2, window_bounds = array<i64: 8, 32>}, {pipeline_mode = #tpu.pipeline_mode<synchronous>, transform_indices = @transform_3, window_bounds = array<i64: 1, 32>}, {pipeline_mode = #tpu.pipeline_mode<synchronous>, transform_indices = @transform_4, window_bounds = array<i64: 8, 32>}, {pipeline_mode = #tpu.pipeline_mode<synchronous>, transform_indices = @transform_5, window_bounds = array<i64: 1, 32>}, {pipeline_mode = #tpu.pipeline_mode<synchronous>, transform_indices = @transform_6, window_bounds = array<i64: 32, 16>}, {pipeline_mode = #tpu.pipeline_mode<synchronous>, transform_indices = @transform_7, window_bounds = array<i64: 32, 16>}, {pipeline_mode = #tpu.pipeline_mode<synchronous>, transform_indices = @transform_8, window_bounds = array<i64: 1, 16>}, {pipeline_mode = #tpu.pipeline_mode<synchronous>, transform_indices = @transform_9, window_bounds = array<i64: 32, 16>}, {pipeline_mode = #tpu.pipeline_mode<synchronous>, transform_indices = @transform_10, window_bounds = array<i64: 32, 16>}, {pipeline_mode = #tpu.pipeline_mode<synchronous>, transform_indices = @transform_11, window_bounds = array<i64: 1, 16>}, {transform_indices = @transform_12, window_bounds = array<i64: 1, 1, 128>}]} {
    %c0_i32 = arith.constant 0 : i32
    %0 = arith.cmpi eq, %arg1, %c0_i32 : i32
    %1 = arith.extui %0 : i1 to i32
    %c0_i32_0 = arith.constant 0 : i32
    %2 = arith.cmpi ne, %1, %c0_i32_0 : i32
    scf.if %2 {
      %cst_16 = arith.constant 0.000000e+00 : f32
      %16 = vector.broadcast %cst_16 : f32 to vector<1x8xf32>
      %c0_17 = arith.constant 0 : index
      %c0_18 = arith.constant 0 : index
      %17 = vector.load %arg15[%c0_17, %c0_18] : memref<1x8xf32, #tpu.memory_space<vmem>>, vector<1x8xf32>
      tpu.vector_store %arg15[%c0_17, %c0_18], %16 {strides = array<i32>} : memref<1x8xf32, #tpu.memory_space<vmem>>, vector<1x8xf32>,
      %cst_19 = arith.constant 0.000000e+00 : f32
      %18 = vector.broadcast %cst_19 : f32 to vector<1x8xf32>
      %c0_20 = arith.constant 0 : index
      %c0_21 = arith.constant 0 : index
      %19 = vector.load %arg16[%c0_20, %c0_21] : memref<1x8xf32, #tpu.memory_space<vmem>>, vector<1x8xf32>
      tpu.vector_store %arg16[%c0_20, %c0_21], %18 {strides = array<i32>} : memref<1x8xf32, #tpu.memory_space<vmem>>, vector<1x8xf32>,
    } else {
    }
    %c0 = arith.constant 0 : index
    %c0_1 = arith.constant 0 : index
    %c0_2 = arith.constant 0 : index
    %3 = vector.load %arg2[%c0, %c0_1, %c0_2] : memref<1x3x128xf32, #tpu.memory_space<vmem>>, vector<1x3x128xf32>
    %c0_3 = arith.constant 0 : index
    %c0_4 = arith.constant 0 : index
    %c0_5 = arith.constant 0 : index
    %4 = vector.load %arg3[%c0_3, %c0_4, %c0_5] : memref<1x3x128xf32, #tpu.memory_space<vmem>>, vector<1x3x128xf32>
    %c0_6 = arith.constant 0 : index
    %c0_7 = arith.constant 0 : index
    %5 = vector.load %arg15[%c0_6, %c0_7] : memref<1x8xf32, #tpu.memory_space<vmem>>, vector<1x3xf32>
    %cst = arith.constant dense<0.000000e+00> : vector<1x3xf32>
    %6 = vector.multi_reduction <add>, %3, %cst [2] : vector<1x3x128xf32> to vector<1x3xf32>
    %7 = arith.addf %5, %6 : vector<1x3xf32>
    %c0_8 = arith.constant 0 : index
    %c0_9 = arith.constant 0 : index
    %8 = vector.load %arg15[%c0_8, %c0_9] : memref<1x8xf32, #tpu.memory_space<vmem>>, vector<1x3xf32>
    tpu.vector_store %arg15[%c0_8, %c0_9], %7 {strides = array<i32>} : memref<1x8xf32, #tpu.memory_space<vmem>>, vector<1x3xf32>,
    %c0_10 = arith.constant 0 : index
    %c0_11 = arith.constant 0 : index
    %9 = vector.load %arg16[%c0_10, %c0_11] : memref<1x8xf32, #tpu.memory_space<vmem>>, vector<1x3xf32>
    %cst_12 = arith.constant dense<0.000000e+00> : vector<1x3xf32>
    %10 = vector.multi_reduction <add>, %4, %cst_12 [2] : vector<1x3x128xf32> to vector<1x3xf32>
    %11 = arith.addf %9, %10 : vector<1x3xf32>
    %c0_13 = arith.constant 0 : index
    %c0_14 = arith.constant 0 : index
    %12 = vector.load %arg16[%c0_13, %c0_14] : memref<1x8xf32, #tpu.memory_space<vmem>>, vector<1x3xf32>
    tpu.vector_store %arg16[%c0_13, %c0_14], %11 {strides = array<i32>} : memref<1x8xf32, #tpu.memory_space<vmem>>, vector<1x3xf32>,
    %c1_i32 = arith.constant 1 : i32
    %13 = arith.cmpi eq, %arg1, %c1_i32 : i32
    %14 = arith.extui %13 : i1 to i32
    %c0_i32_15 = arith.constant 0 : i32
    %15 = arith.cmpi ne, %14, %c0_i32_15 : i32
    scf.if %15 {
      %c0_16 = arith.constant 0 : index
      %c0_17 = arith.constant 0 : index
      %16 = vector.load %arg15[%c0_16, %c0_17] : memref<1x8xf32, #tpu.memory_space<vmem>>, vector<1x8xf32>
      %cst_18 = arith.constant 3.906250e-03 : f32
      %17 = vector.broadcast %cst_18 : f32 to vector<1x8xf32>
      %18 = arith.mulf %16, %17 : vector<1x8xf32>
      %c0_19 = arith.constant 0 : index
      %c0_20 = arith.constant 0 : index
      %19 = vector.load %arg16[%c0_19, %c0_20] : memref<1x8xf32, #tpu.memory_space<vmem>>, vector<1x8xf32>
      %cst_21 = arith.constant 3.906250e-03 : f32
      %20 = vector.broadcast %cst_21 : f32 to vector<1x8xf32>
      %21 = arith.mulf %19, %20 : vector<1x8xf32>
      %c0_22 = arith.constant 0 : index
      %c0_23 = arith.constant 0 : index
      %22 = vector.load %arg4[%c0_22, %c0_23] : memref<8x32xf32, #tpu.memory_space<vmem>>, vector<8x32xf32>
      %cst_24 = arith.constant dense<0.000000e+00> : vector<1x32xf32>
      %23 = tpu.matmul %18, %22, %cst_24 {dimension_numbers = #tpu.dot_dimension_numbers<[1], [0], [0], [1], [0, 0, 1, 1], [], []>} : vector<1x8xf32>, vector<8x32xf32>, vector<1x32xf32> -> vector<1x32xf32>
      %c0_25 = arith.constant 0 : index
      %c0_26 = arith.constant 0 : index
      %24 = vector.load %arg5[%c0_25, %c0_26] : memref<1x32xf32, #tpu.memory_space<vmem>>, vector<1x32xf32>
      %25 = arith.addf %23, %24 : vector<1x32xf32>
      %c0_27 = arith.constant 0 : index
      %c0_28 = arith.constant 0 : index
      %26 = vector.load %arg6[%c0_27, %c0_28] : memref<8x32xf32, #tpu.memory_space<vmem>>, vector<8x32xf32>
      %cst_29 = arith.constant dense<0.000000e+00> : vector<1x32xf32>
      %27 = tpu.matmul %21, %26, %cst_29 {dimension_numbers = #tpu.dot_dimension_numbers<[1], [0], [0], [1], [0, 0, 1, 1], [], []>} : vector<1x8xf32>, vector<8x32xf32>, vector<1x32xf32> -> vector<1x32xf32>
      %c0_30 = arith.constant 0 : index
      %c0_31 = arith.constant 0 : index
      %28 = vector.load %arg7[%c0_30, %c0_31] : memref<1x32xf32, #tpu.memory_space<vmem>>, vector<1x32xf32>
      %29 = arith.addf %27, %28 : vector<1x32xf32>
      %c0_32 = arith.constant 0 : index
      %c0_33 = arith.constant 0 : index
      %30 = vector.load %arg8[%c0_32, %c0_33] : memref<32x16xf32, #tpu.memory_space<vmem>>, vector<32x16xf32>
      %cst_34 = arith.constant dense<0.000000e+00> : vector<1x16xf32>
      %31 = tpu.matmul %25, %30, %cst_34 {dimension_numbers = #tpu.dot_dimension_numbers<[1], [0], [0], [1], [0, 0, 1, 1], [], []>} : vector<1x32xf32>, vector<32x16xf32>, vector<1x16xf32> -> vector<1x16xf32>
      %c0_35 = arith.constant 0 : index
      %c0_36 = arith.constant 0 : index
      %32 = vector.load %arg9[%c0_35, %c0_36] : memref<32x16xf32, #tpu.memory_space<vmem>>, vector<32x16xf32>
      %cst_37 = arith.constant dense<0.000000e+00> : vector<1x16xf32>
      %33 = tpu.matmul %29, %32, %cst_37 {dimension_numbers = #tpu.dot_dimension_numbers<[1], [0], [0], [1], [0, 0, 1, 1], [], []>} : vector<1x32xf32>, vector<32x16xf32>, vector<1x16xf32> -> vector<1x16xf32>
      %34 = arith.addf %31, %33 : vector<1x16xf32>
      %c0_38 = arith.constant 0 : index
      %c0_39 = arith.constant 0 : index
      %35 = vector.load %arg10[%c0_38, %c0_39] : memref<1x16xf32, #tpu.memory_space<vmem>>, vector<1x16xf32>
      %36 = arith.addf %34, %35 : vector<1x16xf32>
      %c0_40 = arith.constant 0 : index
      %c0_41 = arith.constant 0 : index
      %37 = vector.load %arg11[%c0_40, %c0_41] : memref<32x16xf32, #tpu.memory_space<vmem>>, vector<32x16xf32>
      %cst_42 = arith.constant dense<0.000000e+00> : vector<1x16xf32>
      %38 = tpu.matmul %25, %37, %cst_42 {dimension_numbers = #tpu.dot_dimension_numbers<[1], [0], [0], [1], [0, 0, 1, 1], [], []>} : vector<1x32xf32>, vector<32x16xf32>, vector<1x16xf32> -> vector<1x16xf32>
      %c0_43 = arith.constant 0 : index
      %c0_44 = arith.constant 0 : index
      %39 = vector.load %arg12[%c0_43, %c0_44] : memref<32x16xf32, #tpu.memory_space<vmem>>, vector<32x16xf32>
      %cst_45 = arith.constant dense<0.000000e+00> : vector<1x16xf32>
      %40 = tpu.matmul %29, %39, %cst_45 {dimension_numbers = #tpu.dot_dimension_numbers<[1], [0], [0], [1], [0, 0, 1, 1], [], []>} : vector<1x32xf32>, vector<32x16xf32>, vector<1x16xf32> -> vector<1x16xf32>
      %41 = arith.addf %38, %40 : vector<1x16xf32>
      %c0_46 = arith.constant 0 : index
      %c0_47 = arith.constant 0 : index
      %42 = vector.load %arg13[%c0_46, %c0_47] : memref<1x16xf32, #tpu.memory_space<vmem>>, vector<1x16xf32>
      %43 = arith.addf %41, %42 : vector<1x16xf32>
      %cst_48 = arith.constant dense<0xFF800000> : vector<1xf32>
      %44 = vector.multi_reduction <maximumf>, %36, %cst_48 [1] : vector<1x16xf32> to vector<1xf32>
      %45 = vector.shape_cast %44 : vector<1xf32> to vector<1x1xf32>
      %46 = vector.broadcast %45 : vector<1x1xf32> to vector<1x16xf32>
      %47 = arith.subf %36, %46 : vector<1x16xf32>
      %48 = math.exp %47 : vector<1x16xf32>
      %cst_49 = arith.constant dense<0.000000e+00> : vector<1xf32>
      %49 = vector.multi_reduction <add>, %48, %cst_49 [1] : vector<1x16xf32> to vector<1xf32>
      %50 = vector.shape_cast %49 : vector<1xf32> to vector<1x1xf32>
      %51 = math.log %50 : vector<1x1xf32>
      %52 = vector.broadcast %51 : vector<1x1xf32> to vector<1x16xf32>
      %53 = arith.subf %47, %52 : vector<1x16xf32>
      %cst_50 = arith.constant dense<0xFF800000> : vector<1xf32>
      %54 = vector.multi_reduction <maximumf>, %43, %cst_50 [1] : vector<1x16xf32> to vector<1xf32>
      %55 = vector.shape_cast %54 : vector<1xf32> to vector<1x1xf32>
      %56 = vector.broadcast %55 : vector<1x1xf32> to vector<1x16xf32>
      %57 = arith.subf %43, %56 : vector<1x16xf32>
      %58 = math.exp %57 : vector<1x16xf32>
      %cst_51 = arith.constant dense<0.000000e+00> : vector<1xf32>
      %59 = vector.multi_reduction <add>, %58, %cst_51 [1] : vector<1x16xf32> to vector<1xf32>
      %60 = vector.shape_cast %59 : vector<1xf32> to vector<1x1xf32>
      %61 = math.log %60 : vector<1x1xf32>
      %62 = vector.broadcast %61 : vector<1x1xf32> to vector<1x16xf32>
      %63 = arith.subf %57, %62 : vector<1x16xf32>
      %cst_52 = arith.constant 0.000000e+00 : f32
      %64 = vector.broadcast %cst_52 : f32 to vector<1x64xf32>
      %65 = tpu.concatenate %53, %63, %36, %43, %64 in 1 : vector<1x16xf32>, vector<1x16xf32>, vector<1x16xf32>, vector<1x16xf32>, vector<1x64xf32> -> vector<1x128xf32>
      %c0_53 = arith.constant 0 : index
      %c0_54 = arith.constant 0 : index
      %c0_55 = arith.constant 0 : index
      %66 = vector.load %arg14[%c0_53, %c0_54, %c0_55] : memref<1x1x128xf32, #tpu.memory_space<vmem>>, vector<1x1x128xf32>
      %67 = vector.shape_cast %66 : vector<1x1x128xf32> to vector<1x128xf32>
      %68 = vector.shape_cast %65 : vector<1x128xf32> to vector<1x1x128xf32>
      tpu.vector_store %arg14[%c0_53, %c0_54, %c0_55], %68 {strides = array<i32>} : memref<1x1x128xf32, #tpu.memory_space<vmem>>, vector<1x1x128xf32>,
    } else {
    }
    return
  }
  func.func @transform_0(%arg0: i32, %arg1: i32) -> (i32, i32, i32) {
    %c0_i32 = arith.constant 0 : i32
    %c0_i32_0 = arith.constant 0 : i32
    return %arg0, %c0_i32, %arg1 : i32, i32, i32
  }
  func.func @transform_1(%arg0: i32, %arg1: i32) -> (i32, i32, i32) {
    %c0_i32 = arith.constant 0 : i32
    %c0_i32_0 = arith.constant 0 : i32
    return %arg0, %c0_i32, %arg1 : i32, i32, i32
  }
  func.func @transform_2(%arg0: i32, %arg1: i32) -> (i32, i32) {
    %c0_i32 = arith.constant 0 : i32
    %c0_i32_0 = arith.constant 0 : i32
    %c0_i32_1 = arith.constant 0 : i32
    return %c0_i32, %c0_i32_0 : i32, i32
  }
  func.func @transform_3(%arg0: i32, %arg1: i32) -> (i32, i32) {
    %c0_i32 = arith.constant 0 : i32
    %c0_i32_0 = arith.constant 0 : i32
    %c0_i32_1 = arith.constant 0 : i32
    return %c0_i32, %c0_i32_0 : i32, i32
  }
  func.func @transform_4(%arg0: i32, %arg1: i32) -> (i32, i32) {
    %c0_i32 = arith.constant 0 : i32
    %c0_i32_0 = arith.constant 0 : i32
    %c0_i32_1 = arith.constant 0 : i32
    return %c0_i32, %c0_i32_0 : i32, i32
  }
  func.func @transform_5(%arg0: i32, %arg1: i32) -> (i32, i32) {
    %c0_i32 = arith.constant 0 : i32
    %c0_i32_0 = arith.constant 0 : i32
    %c0_i32_1 = arith.constant 0 : i32
    return %c0_i32, %c0_i32_0 : i32, i32
  }
  func.func @transform_6(%arg0: i32, %arg1: i32) -> (i32, i32) {
    %c0_i32 = arith.constant 0 : i32
    %c0_i32_0 = arith.constant 0 : i32
    %c0_i32_1 = arith.constant 0 : i32
    return %c0_i32, %c0_i32_0 : i32, i32
  }
  func.func @transform_7(%arg0: i32, %arg1: i32) -> (i32, i32) {
    %c0_i32 = arith.constant 0 : i32
    %c0_i32_0 = arith.constant 0 : i32
    %c0_i32_1 = arith.constant 0 : i32
    return %c0_i32, %c0_i32_0 : i32, i32
  }
  func.func @transform_8(%arg0: i32, %arg1: i32) -> (i32, i32) {
    %c0_i32 = arith.constant 0 : i32
    %c0_i32_0 = arith.constant 0 : i32
    %c0_i32_1 = arith.constant 0 : i32
    return %c0_i32, %c0_i32_0 : i32, i32
  }
  func.func @transform_9(%arg0: i32, %arg1: i32) -> (i32, i32) {
    %c0_i32 = arith.constant 0 : i32
    %c0_i32_0 = arith.constant 0 : i32
    %c0_i32_1 = arith.constant 0 : i32
    return %c0_i32, %c0_i32_0 : i32, i32
  }
  func.func @transform_10(%arg0: i32, %arg1: i32) -> (i32, i32) {
    %c0_i32 = arith.constant 0 : i32
    %c0_i32_0 = arith.constant 0 : i32
    %c0_i32_1 = arith.constant 0 : i32
    return %c0_i32, %c0_i32_0 : i32, i32
  }
  func.func @transform_11(%arg0: i32, %arg1: i32) -> (i32, i32) {
    %c0_i32 = arith.constant 0 : i32
    %c0_i32_0 = arith.constant 0 : i32
    %c0_i32_1 = arith.constant 0 : i32
    return %c0_i32, %c0_i32_0 : i32, i32
  }
  func.func @transform_12(%arg0: i32, %arg1: i32) -> (i32, i32, i32) {
    %c0_i32 = arith.constant 0 : i32
    %c0_i32_0 = arith.constant 0 : i32
    %c0_i32_1 = arith.constant 0 : i32
    return %arg0, %c0_i32, %c0_i32_0 : i32, i32, i32
  }
}

</mosaic_0001>

<bundles_post_ra>
// kernel: tpu_custom_call.1
= control target key start
LH: loop header
LB: loop body
LE: loop exit
PB: predicated region body
PF: predicated region fallthrough
CT: control target
= control target key end

     0   :  { %17 = vsyncpa [#allocation5], 0  ;;  %s1314_s0 = inlined_call_operand.vmem [shape: f32[2,3,256], index: 0, kind: input, shape index: {}]   ;;  %s1315_s1 = inlined_call_operand.vmem [shape: f32[2,3,256], index: 1, kind: input, shape index: {}]   ;;  %s1316_s2 = inlined_call_operand.vmem [shape: f32[8,32], index: 2, kind: input, shape index: {}]   ;;  %s1317_s3 = inlined_call_operand.vmem [shape: f32[1,32], index: 3, kind: input, shape index: {}]   ;;  %s1318_s4 = inlined_call_operand.vmem [shape: f32[8,32], index: 4, kind: input, shape index: {}]   ;;  %s1319_s5 = inlined_call_operand.vmem [shape: f32[1,32], index: 5, kind: input, shape index: {}]   ;;  %s1320_s6 = inlined_call_operand.vmem [shape: f32[32,16], index: 6, kind: input, shape index: {}]   ;;  %s1321_s7 = inlined_call_operand.vmem [shape: f32[32,16], index: 7, kind: input, shape index: {}]   ;;  %s1322_s8 = inlined_call_operand.vmem [shape: f32[1,16], index: 8, kind: input, shape index: {}]   ;;  %s1323_s9 = inlined_call_operand.vmem [shape: f32[32,16], index: 9, kind: input, shape index: {}]   ;;  %s1324_s10 = inlined_call_operand.vmem [shape: f32[32,16], index: 10, kind: input, shape index: {}]   ;;  %s1325_s11 = inlined_call_operand.vmem [shape: f32[1,16], index: 11, kind: input, shape index: {}]   ;;  %s1326_s12 = inlined_call_operand.hbm [shape: f32[2,1,128], index: 12, kind: output, shape index: {}]  }
   0x1   :  { %19 = vsyncpa [#allocation5 + $0x1], 0  ;;  %s1105_s21 = smov 0   ;;  %s1107_s22 = smov 0  }
   0x2   :  { %s1109_s23 = smov 0   ;;  %s1111_s24 = smov 0  }
   0x3   :  { %s1113_s25 = smov 0   ;;  %s1115_s26 = smov 0  }
   0x4   :  { %s1117_s27 = smov 0   ;;  %s1119_s28 = smov 0  }
   0x5 LB: > { %1333 = sst [smem:[#allocation7_spill]] %s1005_s21  ;;  %s834_s29 = sadd.s32 4294967295, %s1033_s28   ;;  %s1033_s28 = sphi %s1119_s28, %s25_s28   ;;  %s1029_s27 = sphi %s1117_s27, %s1350_s27   ;;  %s1025_s26 = sphi %s1115_s26, %s1353_s26   ;;  %s1021_s25 = sphi %s1113_s25, %s1348_s25   ;;  %s1017_s24 = sphi %s1111_s24, %s1347_s24   ;;  %s1013_s23 = sphi %s1109_s23, %s1346_s23   ;;  %s1009_s22 = sphi %s1107_s22, %s1352_s22   ;;  %s1005_s21 = sphi %s1105_s21, %s1351_s21  }
   0x6   : > { %1334 = sst [smem:[#allocation8_spill]] %s1013_s23  ;;  %s835_s30 = sadd.s32 4294967294, %s1033_s28  }
   0x7   : > { %1335 = sst [smem:[#allocation9_spill]] %s1025_s26  ;;  %s34_s13 = sadd.s32 1, %s1025_s26 }
   0x8   : > { %1336 = sst [smem:[#allocation10_spill]] %s1029_s27  ;;  %p35_p0 = scmp.ge.s32.totalorder %s34_s13, 2 }
   0x9   : > { %s37_s14 = sadd.s32 1, %s1029_s27  ;;  %p320_p1 = scmp.ne.s32.totalorder %s1013_s23, %s1009_s22 }
   0xa   : > { %p321_p2 = scmp.eq.s32.totalorder %s834_s29, 3  ;;  %s1355_s13 = smov (%p35_p0, %s34_s13), 0 }
   0xb   : > { %1337 = sst [smem:[#allocation11_spill]] %s1355_s13  ;;  %s1357_s14 = smov (!%p35_p0, %s37_s14), %s1029_s27 }
   0xc   : > { %p1154_p3 = por %p321_p2, %p320_p1  ;;  %p326_p4 = scmp.ne.s32.totalorder %s1009_s22, %s1005_s21 }
   0xd   : > { %p39_p5 = scmp.ge.s32.totalorder %s1357_s14, 2  ;;  %p327_p6 = scmp.eq.s32.totalorder %s835_s30, 3 }
   0xe   : > { %p838_p7 = scmp.ge.s32.totalorder %s1033_s28, 1  ;;  %p397_p8 = scmp.lt.s32.totalorder %s1033_s28, 5 }
   0xf   : > { %s1359_s14 = smov (%p39_p5, %s1357_s14), 0  ;;  %p1164_p9 = por %p327_p6, %p326_p4 }
  0x10   : > { %1339 = sst [smem:[#allocation12_spill]] %s1359_s14  ;;  %p398_p10 = pnand %p838_p7, %p397_p8 }
  0x11   : > { %s1340_s16 = scalar_select %p1164_p9, 1, 0 }
  0x12   : > { %s307_s17 = ssub.s32 %s1029_s27, %s1359_s14  ;;  %s310_s18 = sadd.s32 1, %s1013_s23 }
  0x13   : > { %1341 = sst [smem:[#allocation13_spill]] %s1340_s16  ;;  %p308_p11 = scmp.eq.s32.totalorder %s307_s17, 0 }
  0x14   : > { %401 = sbr.rel (%p398_p10) target bundleno = 935 (0x3a7), region = 68  ;;  %s447_s20 = sand.u32 (!%p398_p10), 1, %s1009_s22  }
  0x15   : > { %s1172_s19 = scalar_select %p308_p11, %s1013_s23, %s310_s18  }
  0x16   : > { %p449_p12 = scmp.lt.s32.totalorder (!%p398_p10), %s1021_s25, 1  ;;  %p451_p13 = scmp.lt.s32.totalorder (!%p398_p10), %s1017_s24, 1 }
  0x17   : > { %1342 = sst [smem:[#allocation14_spill]] %s1172_s19  ;;  %s1187_s21 = scalar_lea.vmem (!%p398_p10), [#allocation4], %s447_s20 }
  0x18   : > { %p843_p0 = scmp.ne.s32.totalorder (!%p398_p10), %s1017_s24, 0 }
  0x19   : > { %s450_s29 = scalar_select %p449_p12, %s1021_s25, 1 }
  0x1a   : > { %s452_s30 = scalar_select %p451_p13, %s1017_s24, 1 }
  0x1b   : > { %s839_s13 = sshll.u32 %s450_s29, 1  ;;  %468 = sbr.rel (%p843_p0) target bundleno = 35 (0x23), region = 72 }
  0x1c   : > { %s454_s26 = sadd.s32 %s839_s13, %s452_s30 }
  0x1d   : > { %s840_s16 = sshll.u32 %s454_s26, 2 }
  0x1e   : > { %s456_s17 = scalar_lea.vmem %s1314_s0, %s840_s16  ;;  %s464_s23 = scalar_lea.vmem %s1315_s1, %s840_s16 }
  0x20   : > { %vm469_vm0 = vcmask 57344   ;;  %v1035_v0 = vmov 0.0  }
  0x21   : > { %470 = vst.msk [vmem:[#allocation2] sm:$0x1] %vm469_vm0, %v1035_v0 }
  0x22   : > { %471 = vst.msk [vmem:[#allocation3] sm:$0x1] %vm469_vm0, %v1035_v0 }
  0x23 PF: > { %v472_v1 = vld [vmem:[%s456_s17] sm:$0x7]  ;;  %vm475_vm1 = vcmask 1042432   ;;  %v1036_v5 = vmov 0   ;;  %v492_v16 = vlaneseq  ;;  %vm497_vm2 = vcmask 16384   ;;  %p844_p1 = scmp.ne.s32.totalorder %s1017_s24, 1 }
  0x24   : > { %v476_v2 = vsel %vm475_vm1, %v472_v1, 0.0  ;;  %v473_v3 = vld [vmem:[%s464_s23] sm:$0x7]  ;;  %929 = vset.pattern.permute.xlu1 %v1036_v5  ;;  %930 = vset.pattern.permute.xlu0 %v1036_v5  ;;  %s1037_s29 = smov (!%p844_p1), 48   ;;  %s1038_s30 = smov (!%p844_p1), 16  }
  0x25   : > { %477 = vadd.xlane.f32.xlu0 %v476_v2  ;;  %v500_v4 = vsel %vm475_vm1, %v473_v3, 0.0  ;;  %v493_v17 = vand.u32 127, %v492_v16  ;;  %s1039_s17 = smov (!%p844_p1), 32  }
  0x28   : > { %v474_v18 = vld [vmem:[#allocation2] sm:$0x1] }
  0x29   : > { %v499_v22 = vld [vmem:[#allocation3] sm:$0x1] }
  0x2d   : > { %501 = vadd.xlane.f32.xlu0 %v500_v4 }
  0x98   : > { %v478_v6 = vpop.xlane.xlu0 %477 }
  0x99   : > { %v480_v7 = vperm.slane %v478_v6, 0  ;;  %v481_v8 = vperm.slane %v478_v6, 1  ;;  %v482_v9 = vperm.slane %v478_v6, 2 }
  0x9b   : > { %483 = vst [vmem:[#allocation1] ss:$9 sm:$0xff] %v480_v7 }
  0x9c   : > { %485 = vst [vmem:[#allocation1 + $0x1] ss:$9 sm:$0xff] %v481_v8 }
  0x9d   : > { %487 = vst [vmem:[#allocation1 + $0x2] ss:$9 sm:$0xff] %v482_v9 }
  0xa0   : > { %v502_v10 = vpop.xlane.xlu0 %501 }
  0xa1   : > { %v504_v11 = vperm.slane %v502_v10, 0  ;;  %v505_v12 = vperm.slane %v502_v10, 1  ;;  %v506_v13 = vperm.slane %v502_v10, 2 }
  0xa4   : > { %v488_v14 = vld [vmem:[#allocation1] sm:$0xff] }
  0xa5   : > { %490 = vperm.xlu1 %929, %v488_v14   ;;  %507 = vst [vmem:[#allocation1] ss:$9 sm:$0xff] %v504_v11 }
  0xa6   : > { %509 = vst [vmem:[#allocation1 + $0x1] ss:$9 sm:$0xff] %v505_v12 }
  0xa7   : > { %511 = vst [vmem:[#allocation1 + $0x2] ss:$9 sm:$0xff] %v506_v13 }
  0xae   : > { %v512_v15 = vld [vmem:[#allocation1] sm:$0xff] }
  0xaf   : > { %514 = vperm.xlu1 %929, %v512_v15  }
 0x117   : > { %v491_v19 = vpop.permute.xlu1 %490 }
 0x118   : > { %v494_v20 = vperm.slane %v491_v19, %v493_v17 }
 0x11a   : > { %v496_v21 = vadd.f32 %v494_v20, %v474_v18 }
 0x11c   : > { %498 = vst.msk [vmem:[#allocation2] sm:$0x1] %vm497_vm2, %v496_v21 }
 0x121   : > { %v515_v23 = vpop.permute.xlu1 %514 }
 0x122   : > { %v516_v24 = vperm.slane %v515_v23, %v493_v17  ;;  %523 = sbr.rel (%p844_p1) target bundleno = 921 (0x399), region = 76 }
 0x124   : > { %v518_v25 = vadd.f32 %v516_v24, %v499_v22 }
 0x126   : > { %519 = vst.msk [vmem:[#allocation3] sm:$0x1] %vm497_vm2, %v518_v25 }
 0x127   : > { %v528_v26 = vld [vmem:[%s1316_s2] sm:$0xff]  ;;  %v524_v28 = vld [vmem:[#allocation2] sm:$0x1]  ;;  %vm530_vm3 = vcmask 64512   ;;  %v643_v31 = vld [vmem:[%s1324_s10 + $0x18] sm:$0xff]  ;;  %vm587_vm4 = vcmask 261120  }
 0x128   : > { %v554_v27 = vld [vmem:[%s1318_s4] sm:$0xff]  ;;  %549 = vmatpush.msra.mxu0 %v528_v26  ;;  %v525_v29 = vmul.f32 0.00390625, %v524_v28  ;;  %v639_v32 = vld [vmem:[%s1323_s9 + $0x18] sm:$0xff]  ;;  %v642_v36 = vld [vmem:[%s1324_s10 + $0x10] sm:$0xff]  ;;  %vm686_vm5 = vcmask 122880   ;;  %vm723_vm6 = vcmask 130048  }
 0x129   : > { %574 = vmatpush.msra.mxu1 %v554_v27  ;;  %v586_v34 = vld [vmem:[%s1321_s7 + $0x18] sm:$0xff]  ;;  %v638_v37 = vld [vmem:[%s1323_s9 + $0x10] sm:$0xff]  ;;  %v641_v40 = vld [vmem:[%s1324_s10 + $0x8] sm:$0xff]  ;;  %vm726_vm7 = vcmask 392192   ;;  %vm728_vm8 = vcmask 523264  }
 0x12a   : > { %656 = vmatpush.msrb.mxu0 %v643_v31  ;;  %v582_v35 = vld [vmem:[%s1320_s6 + $0x18] sm:$0xff]  ;;  %603 = vmatpush.msra.mxu2 %v586_v34  ;;  %v585_v38 = vld [vmem:[%s1321_s7 + $0x10] sm:$0xff]  ;;  %v637_v41 = vld [vmem:[%s1323_s9 + $0x8] sm:$0xff] }
 0x12b   : > { %676 = vmatpush.msrb.mxu1 %v639_v32  ;;  %845 = vmatmul.msk.f32.vlgmr.msra.gmra.mxu0 %vm530_vm3, %v525_v29  ;;  %v581_v39 = vld [vmem:[%s1320_s6 + $0x10] sm:$0xff]  ;;  %v584_v42 = vld [vmem:[%s1321_s7 + $0x8] sm:$0xff]  ;;  %v640_v44 = vld [vmem:[%s1324_s10] sm:$0xff] }
 0x12c   : > { %626 = vmatpush.msra.mxu3 %v582_v35  ;;  %657 = vmatpush.msrb.mxu0 %v642_v36  ;;  %v580_v43 = vld [vmem:[%s1320_s6 + $0x8] sm:$0xff]  ;;  %v636_v45 = vld [vmem:[%s1323_s9] sm:$0xff] }
 0x12d   : > { %v526_v30 = vld [vmem:[#allocation3] sm:$0x1]  ;;  %677 = vmatpush.msrb.mxu1 %v638_v37  ;;  %604 = vmatpush.msra.mxu2 %v585_v38  ;;  %v583_v46 = vld [vmem:[%s1321_s7] sm:$0xff] }
 0x12e   : > { %v527_v33 = vmul.f32 0.00390625, %v526_v30  ;;  %627 = vmatpush.msra.mxu3 %v581_v39  ;;  %658 = vmatpush.msrb.mxu0 %v641_v40  ;;  %v579_v47 = vld [vmem:[%s1320_s6] sm:$0xff] }
 0x12f   : > { %678 = vmatpush.msrb.mxu1 %v637_v41  ;;  %605 = vmatpush.msra.mxu2 %v584_v42  ;;  %v529_v48 = vld [vmem:[%s1317_s3] sm:$0x1] }
 0x130   : > { %846 = vmatmul.msk.f32.vlgmr.msra.gmra.mxu1 %vm530_vm3, %v527_v33  ;;  %628 = vmatpush.msra.mxu3 %v580_v43  ;;  %v555_v49 = vld [vmem:[%s1319_s5] sm:$0x1] }
 0x131   : > { %659 = vmatpush.msrb.mxu0 %v640_v44  ;;  %679 = vmatpush.msrb.mxu1 %v636_v45  ;;  %v684_v56 = vld [vmem:[%s1325_s11] sm:$0x1] }
 0x132   : > { %606 = vmatpush.msra.mxu2 %v583_v46  ;;  %629 = vmatpush.msra.mxu3 %v579_v47  ;;  %v634_v62 = vld [vmem:[%s1322_s8] sm:$0x1] }
 0x1a8   : > { %v551_v50 = vpop.f32.mrf.mxu0 }
 0x1a9   : > { %v552_v51 = vadd.f32 %v551_v50, %v529_v48 }
 0x1ab   : > { %848 = vmatmul.msk.f32.vlgmr.msra.gmra.mxu3 %vm587_vm4, %v552_v51  ;;  %850 = vmatmul.msk.f32.vlgmr.msrb.gmra.mxu1 %vm587_vm4, %v552_v51 }
 0x1ad   : > { %v576_v52 = vpop.f32.mrf.mxu1 }
 0x1ae   : > { %v577_v53 = vadd.f32 %v576_v52, %v555_v49 }
 0x1b0   : > { %847 = vmatmul.msk.f32.vlgmr.msra.gmra.mxu2 %vm587_vm4, %v577_v53  ;;  %849 = vmatmul.msk.f32.vlgmr.msrb.gmra.mxu0 %vm587_vm4, %v577_v53 }
 0x228   : > { %v681_v54 = vpop.f32.mrf.mxu1 }
 0x22d   : > { %v661_v55 = vpop.f32.mrf.mxu0 }
 0x22e   : > { %v682_v57 = vadd.f32 %v681_v54, %v661_v55  ;;  %v631_v60 = vpop.f32.mrf.mxu3 }
 0x230   : > { %v685_v58 = vadd.f32 %v684_v56, %v682_v57 }
 0x232   : > { %v699_v59 = vsel %vm686_vm5, %v685_v58, -inf }
 0x233   : > { %v608_v61 = vpop.f32.mrf.mxu2  ;;  %700 = vmax.xlane.f32.xlu0 %v699_v59 }
 0x234   : > { %v632_v63 = vadd.f32 %v631_v60, %v608_v61 }
 0x236   : > { %v635_v0 = vadd.f32 %v634_v62, %v632_v63 }
 0x238   : > { %v687_v1 = vsel %vm686_vm5, %v635_v0, -inf }
 0x23b   : > { %688 = vmax.xlane.f32.xlu0 %v687_v1 }
 0x24f   : > { %720 = vrot.lane.b32.xlu0 %v685_v58, %s1037_s29 }
 0x2a6   : > { %v701_v2 = vpop.xlane.xlu0 %700 }
 0x2a7   : > { %v702_v3 = vsub.f32 %v685_v58, %v701_v2 }
 0x2a9   : > { %v703_v4 = vmul.f32 1.442695, %v702_v3 }
 0x2ab   : > { %931 = vpow2.f32 %v703_v4 }
 0x2ae   : > { %v689_v5 = vpop.xlane.xlu0 %688 }
 0x2af   : > { %v690_v6 = vsub.f32 %v635_v0, %v689_v5 }
 0x2b1   : > { %v932_v7 = vpop.eup %931  ;;  %v691_v8 = vmul.f32 1.442695, %v690_v6 }
 0x2b2   : > { %v705_v9 = vsel %vm686_vm5, %v932_v7, 0.0 }
 0x2b3   : > { %933 = vpow2.f32 %v691_v8  ;;  %706 = vadd.xlane.f32.xlu1 %v705_v9 }
 0x2b9   : > { %v934_v10 = vpop.eup %933 }
 0x2ba   : > { %v693_v11 = vsel %vm686_vm5, %v934_v10, 0.0 }
 0x2bb   : > { %694 = vadd.xlane.f32.xlu1 %v693_v11 }
 0x2c1   : > { %v721_v23 = vpop.permute.xlu0 %720 }
 0x326   : > { %v707_v12 = vpop.xlane.xlu1 %706 }
 0x327   : > { %935 = vlog2.f32 %v707_v12 }
 0x32d   : > { %v936_v13 = vpop.eup %935 }
 0x32e   : > { %v709_v14 = vmul.f32 0.6931472, %v936_v13  ;;  %v695_v16 = vpop.xlane.xlu1 %694 }
 0x32f   : > { %937 = vlog2.f32 %v695_v16 }
 0x330   : > { %v710_v15 = vsub.f32 %v702_v3, %v709_v14 }
 0x332   : > { %712 = vrot.lane.b32.xlu2 %v710_v15, %s1038_s30 }
 0x335   : > { %v938_v17 = vpop.eup %937 }
 0x336   : > { %v697_v19 = vmul.f32 0.6931472, %v938_v17 }
 0x338   : > { %v698_v20 = vsub.f32 %v690_v6, %v697_v19 }
 0x33a   : > { %716 = vrot.lane.b32.xlu2 %v635_v0, %s1039_s17 }
 0x38c   : > { %v713_v18 = vpop.permute.xlu2 %712 }
 0x38d   : > { %v724_v21 = vsel %vm723_vm6, %v698_v20, %v713_v18 }
 0x394   : > { %v717_v22 = vpop.permute.xlu2 %716 }
 0x395   : > { %v725_v24 = vsel %vm587_vm4, %v724_v21, %v717_v22 }
 0x396   : > { %v727_v25 = vsel %vm726_vm7, %v725_v24, %v721_v23 }
 0x397   : > { %v729_v26 = vsel %vm728_vm8, %v727_v25, 0.0 }
 0x398   : > { %730 = vst [vmem:[%s1187_s21] sm:$0x1] %v729_v26 }
 0x399 PF: > { %s740_s26 = scalar_lea.hbm %s1326_s12, %s1021_s25  ;;  %s742_s27 = sshll.u32 %s1187_s21, 4  ;;  %s743_s27 = int_to_ptr.vmem [resolvable:$true] %s742_s27 }
 0x39a   : > { %s744_s13 = sshll.u32 %s740_s26, 4  ;;  %s732_s14 = scalar_lea.sflag [#allocation5], %s447_s20  ;;  %s745_s13 = int_to_ptr.hbm [resolvable:$true] %s744_s13 }
 0x39b   : > { %s953_s16 = sshra.s32 %s745_s13, 4  ;;  %s959_s30 = scalar_lea.hbm %s1326_s12, 2  ;;  %s954_s16 = int_to_ptr.hbm [resolvable:$true] %s953_s16 }
 0x39c   : > { %s955_s24 = scalar_lea.hbm %s954_s16, 1  ;;  %p960_p6 = scmp.lt.s32.totalorder %s954_s16, %s1326_s12 }
 0x39d   : > { %p956_p2 = scmp.ne.s32.totalorder %s954_s16, %s955_s24  ;;  %p961_p7 = scmp.lt.s32.totalorder %s959_s30, %s955_s24 }
 0x39f   : > { %p957_p4 = pnand %p956_p2, %p1154_p3  ;;  %p962_p8 = por %p961_p7, %p960_p6 }
 0x3a1   : > { %p958_p5 = pneg %p957_p4 }
 0x3a3   : > { %p963_p10 = pnand %p962_p8, %p958_p5 }
 0x3a5   : > { %966 = shalt.err (!%p963_p10)
}
 0x3a6   : > { %853 = dma.vmem_to_hbm [thread:$0]  (%p1154_p3), %s743_s27, 16, %s745_s13, %s732_s14  }
 0x3a7 PF: > { %s1343_s21 = sld [smem:[#allocation7_spill]]  ;;  %p859_p11 = scmp.ge.s32.totalorder %s1033_s28, 2 }
 0x3a9   : > { %p856_p12 = pnand %p859_p11, %p1164_p9 }
 0x3ab   : > { %p857_p13 = pneg %p856_p12 }
 0x3ad   : > { %s756_s20 = sand.u32 1, %s1343_s21  }
 0x3ae   : > { %s757_s23 = scalar_lea.sflag [#allocation5], %s756_s20 }
 0x3af   : > { %1000 = dma.done.wait (%p857_p13), %s757_s23, 16  }
 0x3b0   : > { %1002 = vsyncadd (%p857_p13), %s757_s23, 4294967280  ;;  %s25_s28 = sadd.s32 1, %s1033_s28   ;;  %s1345_s26 = sld [smem:[#allocation8_spill]] }
 0x3b1   : > { %p22_p0 = scmp.ge.s32.totalorder %s25_s28, 6   ;;  %s1346_s23 = sld [smem:[#allocation14_spill]] }
 0x3b2   : > { %s1347_s24 = sld [smem:[#allocation9_spill]]  ;;  %s1351_s21 = smov %s1009_s22 }
 0x3b3   : > { %s1348_s25 = sld [smem:[#allocation10_spill]] }
 0x3b4   : > { %s1349_s15 = sld [smem:[#allocation11_spill]] }
 0x3b5   : > { %s1350_s27 = sld [smem:[#allocation12_spill]] }
 0x3b6   : > { %s1352_s22 = smov %s1345_s26  ;;  %24 = sbr.rel (!%p22_p0) target bundleno = 5 (0x5), region = 118 }
 0x3ba   : > { %s1353_s26 = smov %s1349_s15 }
 0x3bb   :  { %762 = vsyncpa [#allocation5], 1 }
 0x3bc   :  { %764 = vsyncpa [#allocation5 + $0x1], 1 }

</bundles_post_ra>
